<compile_context>
chip_gen: v6e
topology: v6e:2x2x1
jax: 0.10.0
libtpu: 0.0.40
codegen_flags: <defaults>
</compile_context>

<pallas_src>
import math

import jax
import jax.numpy as jnp
from jax.experimental import pallas as pl
from jax.experimental.pallas import tpu as pltpu


# ---------------------------------------------------------------------------
# Tunables
# ---------------------------------------------------------------------------
_VMEM_BUDGET_BYTES = 28 * (1 << 20)     # target double-buffered tile footprint
_VMEM_LIMIT_BYTES = 32 * (1 << 20)      # scoped-VMEM limit handed to Mosaic
_RESIDENT_WEIGHT_BYTES = 8 * (1 << 20)  # weight-resident fast-path cutoff
_PALLAS_MIN_MACS = 1 << 20              # below this, XLA's fused dot wins


def _round_up(v: int, m: int) -> int:
    return -(-v // m) * m


def _cdiv(a: int, b: int) -> int:
    return -(-a // b)


def _balanced_tile(dim: int, target: int, granule: int) -> int:
    """Largest granule-aligned tile <= target minimizing last-tile waste.

    If dim <= target the full dimension is used (always layout-legal)."""
    if dim <= target:
        return dim
    n_tiles = _cdiv(dim, target)
    tile = _round_up(_cdiv(dim, n_tiles), granule)
    return min(tile, _round_up(target, granule))


# ---------------------------------------------------------------------------
# Kernels
# ---------------------------------------------------------------------------
def _resident_kernel(x_ref, w_ref, o_ref):
    """Whole weight resident in VMEM; one MXU dot per M tile, no K loop."""
    o_ref[...] = jnp.dot(
        x_ref[...], w_ref[...], preferred_element_type=jnp.float32
    ).astype(o_ref.dtype)


def _tiled_kernel(x_ref, w_ref, o_ref):
    """3-D grid; f32 partials accumulate directly into the resident out block."""
    k = pl.program_id(2)
    part = jnp.dot(x_ref[...], w_ref[...], preferred_element_type=jnp.float32)

    @pl.when(k == 0)
    def _():
        o_ref[...] = part

    @pl.when(k != 0)
    def _():
        o_ref[...] += part


# ---------------------------------------------------------------------------
# pallas_call wrappers
# ---------------------------------------------------------------------------
def _cost(M, K, N):
    return pl.CostEstimate(
        flops=2 * M * K * N,
        transcendentals=0,
        bytes_accessed=4 * (M * K + K * N + M * N),
    )


def _resident_matmul(x2d, weight, tm):
    M, K = x2d.shape
    _, N = weight.shape
    grid = (_cdiv(M, tm),)
    return pl.pallas_call(
        _resident_kernel,
        out_shape=jax.ShapeDtypeStruct((M, N), x2d.dtype),
        grid_spec=pltpu.PrefetchScalarGridSpec(
            num_scalar_prefetch=0,
            grid=grid,
            in_specs=[
                pl.BlockSpec((tm, K), lambda i: (i, 0)),
                # Constant block index -> fetched once, stays resident in VMEM.
                pl.BlockSpec((K, N), lambda i: (0, 0)),
            ],
            out_specs=pl.BlockSpec((tm, N), lambda i: (i, 0)),
        ),
        compiler_params=pltpu.CompilerParams(
            dimension_semantics=("parallel",),
            vmem_limit_bytes=_VMEM_LIMIT_BYTES,
        ),
        cost_estimate=_cost(M, K, N),
    )(x2d, weight)


def _tiled_matmul(x2d, weight, *, tm_target=512, tn_target=1024, tk_target=1024):
    M, K = x2d.shape
    _, N = weight.shape

    tm = _balanced_tile(M, tm_target, 8)
    tn = _balanced_tile(N, tn_target, 128)
    tk = _balanced_tile(K, tk_target, 128)

    def footprint(a, b, c):  # double-buffered f32 x / w / out tiles
        return 2 * 4 * (a * c + c * b + a * b)

    # Rarely triggered with the defaults; keeps any shape within budget.
    while footprint(tm, tn, tk) > _VMEM_BUDGET_BYTES and tk > 128:
        tk = max(128, _round_up(tk // 2, 128))
    while footprint(tm, tn, tk) > _VMEM_BUDGET_BYTES and tn > 128:
        tn = max(128, _round_up(tn // 2, 128))
    while footprint(tm, tn, tk) > _VMEM_BUDGET_BYTES and tm > 8:
        tm = max(8, _round_up(tm // 2, 8))

    # Only K needs zero padding (garbage along K would corrupt valid outputs);
    # partial M/N edge blocks only touch output positions that are discarded.
    # For typical module sizes K % tk == 0, so this is a no-op.
    Kp = _round_up(K, tk)
    xp = x2d if Kp == K else jnp.pad(x2d, ((0, 0), (0, Kp - K)))
    wp = weight if Kp == K else jnp.pad(weight, ((0, Kp - K), (0, 0)))

    grid = (_cdiv(M, tm), _cdiv(N, tn), Kp // tk)

    return pl.pallas_call(
        _tiled_kernel,
        out_shape=jax.ShapeDtypeStruct((M, N), x2d.dtype),
        grid_spec=pltpu.PrefetchScalarGridSpec(
            num_scalar_prefetch=0,
            grid=grid,
            in_specs=[
                pl.BlockSpec((tm, tk), lambda i, j, k: (i, k)),
                pl.BlockSpec((tk, tn), lambda i, j, k: (k, j)),
            ],
            out_specs=pl.BlockSpec((tm, tn), lambda i, j, k: (i, j)),
        ),
        compiler_params=pltpu.CompilerParams(
            dimension_semantics=("parallel", "parallel", "arbitrary"),
            vmem_limit_bytes=_VMEM_LIMIT_BYTES,
        ),
        cost_estimate=_cost(M, Kp, N),
    )(xp, wp)


def _pallas_matmul(x2d, weight):
    assert x2d.dtype == jnp.float32 and weight.dtype == jnp.float32
    M, K = x2d.shape
    Kw, N = weight.shape
    assert K == Kw, "inner dims must match"

    w_bytes = K * N * 4
    if w_bytes <= _RESIDENT_WEIGHT_BYTES:
        # Row budget remaining after the (conservatively double-buffered) weight.
        rest = _VMEM_BUDGET_BYTES - 2 * w_bytes
        tm_cap = rest // (2 * 4 * (K + N))
        if tm_cap >= 8:
            tm = min(512, (tm_cap // 8) * 8)
            tm = _balanced_tile(M, tm, 8)
            return _resident_matmul(x2d, weight, tm)
    return _tiled_matmul(x2d, weight)


# ---------------------------------------------------------------------------
# Module-equivalent forward
# ---------------------------------------------------------------------------
def non_learnable_weight_forward(x, weight, *, force_pallas=None):
    """Pallas equivalent of NonLearnableWeight(weight)(x): matmul(x, weight)."""
    K, N = weight.shape
    assert x.shape[-1] == K, "inner dims must match"
    lead = x.shape[:-1]
    m = math.prod(lead) if lead else 1
    x2d = x.reshape(m, K)

    is_f32 = x.dtype == jnp.float32 and weight.dtype == jnp.float32
    if force_pallas is None:
        use_pallas = is_f32 and (m * K * N) >= _PALLAS_MIN_MACS
    else:
        use_pallas = bool(force_pallas) and is_f32

    if use_pallas:
        out = _pallas_matmul(x2d, weight)
    else:
        # TODO(synk): bf16-input / f32-accumulate Pallas path; non-f32 dtypes and
        # tiny problems currently fall back to XLA's fused dot.
        out = jnp.matmul(x2d, weight)

    return out.reshape(*lead, N)


# ---------------------------------------------------------------------------
# Demo / self-test
# ---------------------------------------------------------------------------
if __name__ == "__main__":
    key = jax.random.PRNGKey(0)
    k1, k2, k3, k4, k5, k6 = jax.random.split(key, 6)

    # --- Small module-sized demo (forces the Pallas weight-resident path). ---
    batch, seq, hidden, out_dim = 2, 8, 32, 16
    x_small = jax.random.normal(k1, (batch, seq, hidden), dtype=jnp.float32)
    w_small = jax.random.normal(k2, (hidden, out_dim), dtype=jnp.float32)

    y_small = non_learnable_weight_forward(x_small, w_small, force_pallas=True)
    jax.block_until_ready(y_small)
    y_small_ref = jnp.matmul(x_small, w_small, precision=jax.lax.Precision.HIGHEST)
    assert y_small.shape == (batch, seq, out_dim)
    assert jnp.allclose(y_small, y_small_ref, atol=1e-4, rtol=1e-4)

    # --- Moderate shapes: 1024x1024 f32 weight (4 MiB) -> weight-resident
    #     fast path, single-DMA weight, M-only grid. ---
    b2, s2, h2, o2 = 2, 256, 1024, 1024
    x_res = jax.random.normal(k3, (b2, s2, h2), dtype=jnp.float32)
    w_res = jax.random.normal(k4, (h2, o2), dtype=jnp.float32)

    y_res = non_learnable_weight_forward(x_res, w_res)
    jax.block_until_ready(y_res)
    y_res_ref = jnp.matmul(x_res, w_res, precision=jax.lax.Precision.HIGHEST)
    assert y_res.shape == (b2, s2, o2)
    assert jnp.allclose(y_res, y_res_ref, atol=1e-3, rtol=1e-3)

    # --- Weight above the residency cutoff (1536x1536 f32 = 9 MiB):
    #     exercises the tiled 3-D grid with direct output accumulation. ---
    b3, s3, h3, o3 = 2, 128, 1536, 1536
    x_til = jax.random.normal(k5, (b3, s3, h3), dtype=jnp.float32)
    w_til = jax.random.normal(k6, (h3, o3), dtype=jnp.float32)

    y_til = non_learnable_weight_forward(x_til, w_til)
    jax.block_until_ready(y_til)
    y_til_ref = jnp.matmul(x_til, w_til, precision=jax.lax.Precision.HIGHEST)
    assert y_til.shape == (b3, s3, o3)
    assert jnp.allclose(y_til, y_til_ref, atol=2e-3, rtol=2e-3)

    print("KERNEL_OK")
</pallas_src>

<mosaic_0001>
module attributes {stable_mosaic.version = 11 : i64} {
  func.func @_resident_kernel(%arg0: i32, %arg1: memref<16x32xf32, #tpu.memory_space<vmem>>, %arg2: memref<32x16xf32, #tpu.memory_space<vmem>>, %arg3: memref<16x16xf32, #tpu.memory_space<vmem>>) attributes {dimension_semantics = [#tpu.dimension_semantics<parallel>], iteration_bounds = array<i64: 1>, scalar_prefetch = 0 : i64, scratch_operands = 0 : i64, tpu.core_type = #tpu.core_type<tc>, window_params = [{transform_indices = @transform_0, window_bounds = array<i64: 16, 32>}, {pipeline_mode = #tpu.pipeline_mode<synchronous>, transform_indices = @transform_1, window_bounds = array<i64: 32, 16>}, {transform_indices = @transform_2, window_bounds = array<i64: 16, 16>}]} {
    %c0 = arith.constant 0 : index
    %c0_0 = arith.constant 0 : index
    %0 = vector.load %arg1[%c0, %c0_0] : memref<16x32xf32, #tpu.memory_space<vmem>>, vector<16x32xf32>
    %c0_1 = arith.constant 0 : index
    %c0_2 = arith.constant 0 : index
    %1 = vector.load %arg2[%c0_1, %c0_2] : memref<32x16xf32, #tpu.memory_space<vmem>>, vector<32x16xf32>
    %cst = arith.constant dense<0.000000e+00> : vector<16x16xf32>
    %2 = tpu.matmul %0, %1, %cst {dimension_numbers = #tpu.dot_dimension_numbers<[1], [0], [0], [1], [0, 0, 1, 1], [], []>} : vector<16x32xf32>, vector<32x16xf32>, vector<16x16xf32> -> vector<16x16xf32>
    %c0_3 = arith.constant 0 : index
    %c0_4 = arith.constant 0 : index
    %3 = vector.load %arg3[%c0_3, %c0_4] : memref<16x16xf32, #tpu.memory_space<vmem>>, vector<16x16xf32>
    tpu.vector_store %arg3[%c0_3, %c0_4], %2 {strides = array<i32>} : memref<16x16xf32, #tpu.memory_space<vmem>>, vector<16x16xf32>,
    return
  }
  func.func @transform_0(%arg0: i32) -> (i32, i32) {
    %c0_i32 = arith.constant 0 : i32
    %c0_i32_0 = arith.constant 0 : i32
    return %arg0, %c0_i32 : i32, i32
  }
  func.func @transform_1(%arg0: i32) -> (i32, i32) {
    %c0_i32 = arith.constant 0 : i32
    %c0_i32_0 = arith.constant 0 : i32
    %c0_i32_1 = arith.constant 0 : i32
    return %c0_i32, %c0_i32_0 : i32, i32
  }
  func.func @transform_2(%arg0: i32) -> (i32, i32) {
    %c0_i32 = arith.constant 0 : i32
    %c0_i32_0 = arith.constant 0 : i32
    return %arg0, %c0_i32 : i32, i32
  }
}

</mosaic_0001>

<bundles_post_ra>
// kernel: tpu_custom_call.1
= control target key start
LH: loop header
LB: loop body
LE: loop exit
PB: predicated region body
PF: predicated region fallthrough
CT: control target
= control target key end

     0   :  { %vm18_vm0 = vcmask 261120   ;;  %s202_s0 = inlined_call_operand.vmem [shape: f32[16,32], index: 0, kind: input, shape index: {}]   ;;  %s203_s1 = inlined_call_operand.vmem [shape: f32[32,16], index: 1, kind: input, shape index: {}]   ;;  %s204_s2 = inlined_call_operand.hbm [shape: f32[16,16], index: 2, kind: output, shape index: {}]  }
   0x1   :  { %v17_v0 = vld [vmem:[%s203_s1 + $0x18] sm:$0xff]  ;;  %v16_v1 = vld [vmem:[%s203_s1 + $0x10] sm:$0xff]  ;;  %v12_v2 = vld [vmem:[%s202_s0] sm:$0xff] }
   0x2   :  { %127 = vmatprep.subr.mxu0 %v17_v0  ;;  %v15_v3 = vld [vmem:[%s203_s1 + $0x8] sm:$0xff]  ;;  %135 = vmatprep.mubr.msk.f32.mxu0 %vm18_vm0, %v12_v2 }
   0x3   :  { %128 = vmatpush3.msra.mxu0 %v17_v0 }
   0x4   :  { %7 = vsyncpa [#allocation3], 0  ;;  %129 = vmatprep.subr.mxu0 %v16_v1  ;;  %v14_v4 = vld [vmem:[%s203_s1] sm:$0xff]  ;;  %v13_v5 = vld [vmem:[%s202_s0 + $0x8] sm:$0xff]  ;;  %s163_s21 = smov [#allocation2]   ;;  %vm100_vm1 = vcmask 130048  }
   0x5   :  { %130 = vmatpush3.msra.mxu0 %v16_v1  ;;  %s108_s22 = sshll.u32 %s163_s21, 4  ;;  %s109_s22 = int_to_ptr.vmem [resolvable:$true] %s108_s22 }
   0x6   :  { %131 = vmatprep.subr.mxu0 %v15_v3  ;;  %s141_s23 = scalar_lea.vmem %s109_s22, 256  ;;  %p146_p1 = scmp.lt.s32.totalorder %s109_s22, %s109_s22 }
   0x7   :  { %132 = vmatpush3.msra.mxu0 %v15_v3  ;;  %p142_p0 = scmp.ne.s32.totalorder %s109_s22, %s141_s23  ;;  %p147_p2 = scmp.lt.s32.totalorder %s141_s23, %s141_s23 }
   0x8   :  { %133 = vmatprep.subr.mxu0 %v14_v4 }
   0x9   :  { %134 = vmatpush3.msra.mxu0 %v14_v4  ;;  %p148_p3 = por %p147_p2, %p146_p1 }
   0xa   :  { %136 = vmatmul.mubr.msk.f32.vlgmr.msra.gmra.mxu0 %vm18_vm0, %v13_v5 }
   0xb   :  { %p149_p4 = pnand %p148_p3, %p142_p0 }
  0xca   :  { %v137_v6 = vpop.f32.mrf.mxu0 }
  0xcb   :  { %102 = vst.msk [vmem:[#allocation2 + $0x8] sm:$0xff] %vm100_vm1, %v137_v6 }
  0xcc   :  { %v91_v7 = vpop.f32.mrf.mxu0 }
  0xcd   :  { %101 = vst.msk [vmem:[#allocation2] sm:$0xff] %vm100_vm1, %v91_v7 }
  0xce   :  { %152 = shalt.err (!%p149_p4)
}
  0xcf   :  { %s164_s1 = smov 128   ;;  %s165_s0 = smov 8  }
  0xd0   :  { %114 = dma.vmem_to_hbm [thread:$0]  %s109_s22, 256, %s204_s2, [#allocation3], %s164_s1, %s164_s1, %s165_s0  }
  0xd1   :  { %161 = dma.done.wait [#allocation3], 256  }
  0xd2   :  { %162 = vsyncadd [#allocation3], 4294967040 }
  0xd3   :  { %118 = vsyncpa [#allocation3], 1 }

</bundles_post_ra>
